<compile_context>
chip_gen: v5e
topology: v5e:2x2
jax: 0.10.0
libtpu: 0.0.40
codegen_flags: <defaults>
</compile_context>

<pallas_src>
import jax
import jax.numpy as jnp
from jax.experimental import pallas as pl
from jax.experimental.pallas import tpu as pltpu

# MXU operand dtype (accumulation is always f32). Set to jnp.float32 for bit-exact
# float32 Linear semantics (kernel is memory-bound, so the perf cost is small).
COMPUTE_DTYPE = jnp.bfloat16
# Output dtype. jnp.float32 matches the PyTorch module; switch to jnp.bfloat16 to halve
# the dominant HBM writeback traffic if downstream consumers tolerate it.
OUT_DTYPE = jnp.float32

LANE = 128                 # TPU lane width
SUBLANE = 8                # f32 sublane granularity for batch-tile rounding
MAX_BATCH_TILE = 8192      # big tiles amortize per-grid-step overhead
VMEM_TILE_BUDGET = 24 << 20  # keep streamed tiles comfortably inside v7x's 64 MiB VMEM


def _round_up(n, m):
    return ((n + m - 1) // m) * m


def _choose_tb(batch, in_width, out_width, out_bytes):
    """Pick the batch tile: as large as the VMEM budget allows, but with >= 2 grid
    steps when there is enough work so v7x's two TensorCores both get tiles."""
    # Per-row VMEM footprint: double-buffered f32 x/a + output stream, plus the
    # single-buffered in-kernel intermediates (f32 h1/h2 and bf16 casts).
    per_row = (2 * (4 * in_width + out_bytes * out_width)
               + 4 * (64 + 128)
               + 2 * (in_width + 64 + 128 + out_width))
    cap = max(SUBLANE, (VMEM_TILE_BUDGET // per_row) // SUBLANE * SUBLANE)
    tb = min(MAX_BATCH_TILE, cap)
    # v7x megacore: guarantee >= 2 batch tiles when the batch is worth splitting.
    if batch <= tb and batch > 2 * SUBLANE:
        tb = _round_up(pl.cdiv(batch, 2), SUBLANE)
    # Never bigger than the (sublane-rounded) batch itself.
    return max(SUBLANE, min(tb, _round_up(batch, SUBLANE)))


def _mlp_kernel(x_ref, a_ref, w1x_ref, w1a_ref, b1_ref, w2_ref, b2_ref,
                w3_ref, b3_ref, out_ref):
    cd = COMPUTE_DTYPE
    x = x_ref[...].astype(cd)
    a = a_ref[...].astype(cd)
    # h1 = relu([x, a] @ W1 + b1)  ==  relu(x @ W1x + a @ W1a + b1)
    h1 = jnp.dot(x, w1x_ref[...].astype(cd), preferred_element_type=jnp.float32)
    h1 = h1 + jnp.dot(a, w1a_ref[...].astype(cd), preferred_element_type=jnp.float32)
    h1 = jnp.maximum(h1 + b1_ref[...], 0.0)              # f32 ReLU on the accumulator
    # h2 = relu(h1 @ W2 + b2)
    h2 = jnp.dot(h1.astype(cd), w2_ref[...].astype(cd),
                 preferred_element_type=jnp.float32)
    h2 = jnp.maximum(h2 + b2_ref[...], 0.0)
    # out = h2 @ W3 + b3
    out = jnp.dot(h2.astype(cd), w3_ref[...].astype(cd),
                  preferred_element_type=jnp.float32)
    out_ref[...] = (out + b3_ref[...]).astype(out_ref.dtype)


@jax.jit
def state_generator_forward(x, a, params):
    """Pallas equivalent of State_Generator.forward(x, a)."""
    B, state_dim = x.shape
    action_dim = a.shape[1]
    out_dim = params["w3"].shape[1]          # == state_dim
    in_width = state_dim + action_dim

    # Lane-pad the output columns only when out_dim is already large and close to a
    # multiple of 128; for small state_dim, padding would inflate the dominant HBM
    # writeback traffic (masked stores cost the same op count, fewer bytes win).
    w3, b3 = params["w3"], params["b3"]
    n3 = out_dim
    if out_dim >= LANE and out_dim % LANE:
        pad = LANE - out_dim % LANE
        if pad * 8 <= out_dim:               # <= ~12.5% extra writeback for unmasked vst
            n3 = out_dim + pad
            w3 = jnp.pad(w3, ((0, 0), (0, pad)))
            b3 = jnp.pad(b3, ((0, 0), (0, pad)))

    out_bytes = jnp.dtype(OUT_DTYPE).itemsize
    tb = _choose_tb(B, in_width, n3, out_bytes)
    grid = (pl.cdiv(B, tb),)   # no row padding: Pallas handles the partial final block

    row_spec = lambda d: pl.BlockSpec((tb, d), lambda i: (i, 0))      # streamed per tile
    resident = lambda shape: pl.BlockSpec(shape, lambda i: (0, 0))    # stays in VMEM

    weight_bytes = sum(int(v.size) * jnp.dtype(v.dtype).itemsize
                       for v in (params["w1x"], params["w1a"], params["b1"],
                                 params["w2"], params["b2"], w3, b3))
    # Scoped-VMEM limit: weights + double-buffered streamed tiles + intermediates + margin.
    vmem_needed = (weight_bytes
                   + 2 * tb * (4 * in_width + out_bytes * n3)
                   + tb * (4 * (64 + 128) + 2 * (in_width + 64 + 128 + n3))
                   + (4 << 20))
    vmem_limit = int(min(max(vmem_needed, 32 << 20), 48 << 20))

    cost = pl.CostEstimate(
        flops=2 * B * (in_width * 64 + 64 * 128 + 128 * n3),
        transcendentals=0,
        bytes_accessed=4 * B * in_width + out_bytes * B * n3 + weight_bytes,
    )

    out = pl.pallas_call(
        _mlp_kernel,
        out_shape=jax.ShapeDtypeStruct((B, n3), OUT_DTYPE),
        grid=grid,
        in_specs=[
            row_spec(state_dim),             # x tile
            row_spec(action_dim),            # a tile
            resident((state_dim, 64)),       # W1x
            resident((action_dim, 64)),      # W1a
            resident((1, 64)),               # b1
            resident((64, 128)),             # W2
            resident((1, 128)),              # b2
            resident((128, n3)),             # W3
            resident((1, n3)),               # b3
        ],
        out_specs=row_spec(n3),
        compiler_params=pltpu.CompilerParams(
            dimension_semantics=("parallel",),   # shard batch tiles across TCs (v7x)
            vmem_limit_bytes=vmem_limit,
        ),
        cost_estimate=cost,
    )(x, a, params["w1x"], params["w1a"], params["b1"],
      params["w2"], params["b2"], w3, b3)

    if n3 != out_dim:
        out = out[:, :out_dim]
    return out


def init_params(key, state_dim, action_dim):
    """Synthetic parameters matching the PyTorch module. PyTorch Linear stores (out, in);
    we store the transpose (in, out) and split W1 into its x- and a-row blocks so the
    kernel never needs the concatenated input. Weights in COMPUTE_DTYPE, biases in f32."""
    k = jax.random.split(key, 6)
    scale = 0.1
    w1 = scale * jax.random.normal(k[0], (state_dim + action_dim, 64), jnp.float32)
    return {
        "w1x": w1[:state_dim].astype(COMPUTE_DTYPE),
        "w1a": w1[state_dim:].astype(COMPUTE_DTYPE),
        "b1": scale * jax.random.normal(k[1], (1, 64), jnp.float32),
        "w2": (scale * jax.random.normal(k[2], (64, 128), jnp.float32)).astype(COMPUTE_DTYPE),
        "b2": scale * jax.random.normal(k[3], (1, 128), jnp.float32),
        "w3": (scale * jax.random.normal(k[4], (128, state_dim), jnp.float32)).astype(COMPUTE_DTYPE),
        "b3": scale * jax.random.normal(k[5], (1, state_dim), jnp.float32),
    }


def _reference(x, a, p):
    """Pure-JAX f32 reference mirroring the PyTorch forward."""
    nos = jnp.concatenate([x, a], axis=1)
    w1 = jnp.concatenate([p["w1x"], p["w1a"]], axis=0).astype(jnp.float32)
    h1 = jnp.maximum(nos @ w1 + p["b1"], 0.0)
    h2 = jnp.maximum(h1 @ p["w2"].astype(jnp.float32) + p["b2"], 0.0)
    return h2 @ p["w3"].astype(jnp.float32) + p["b3"]


if __name__ == "__main__":
    state_dim, action_dim = 8, 4
    key = jax.random.PRNGKey(0)
    kx, ka, kp = jax.random.split(key, 3)
    params = init_params(kp, state_dim, action_dim)

    # bf16 MXU operands with f32 accumulation -> compare against the f32 reference
    # with a tolerance covering bf16 activation rounding.
    tol = dict(atol=2e-2, rtol=2e-2)

    # Small batch (single grid step).
    batch = 2
    x = jax.random.normal(kx, (batch, state_dim), jnp.float32)
    a = jax.random.normal(ka, (batch, action_dim), jnp.float32)
    out = jax.block_until_ready(state_generator_forward(x, a, params))
    ref = _reference(x, a, params)
    assert out.shape == (batch, state_dim), out.shape
    assert jnp.allclose(out, ref, **tol), float(jnp.max(jnp.abs(out - ref)))

    # Larger batch exercising multi-step grid + partial final block (no row padding).
    batch2 = 300
    x2 = jax.random.normal(kx, (batch2, state_dim), jnp.float32)
    a2 = jax.random.normal(ka, (batch2, action_dim), jnp.float32)
    out2 = jax.block_until_ready(state_generator_forward(x2, a2, params))
    ref2 = _reference(x2, a2, params)
    assert out2.shape == (batch2, state_dim), out2.shape
    assert jnp.allclose(out2, ref2, **tol), float(jnp.max(jnp.abs(out2 - ref2)))

    print("KERNEL_OK")
</pallas_src>

<mosaic_0001>
module attributes {stable_mosaic.version = 11 : i64} {
  func.func @_mlp_kernel(%arg0: i32, %arg1: memref<8x8xf32, #tpu.memory_space<vmem>>, %arg2: memref<8x4xf32, #tpu.memory_space<vmem>>, %arg3: memref<8x64xbf16, #tpu.memory_space<vmem>>, %arg4: memref<4x64xbf16, #tpu.memory_space<vmem>>, %arg5: memref<1x64xf32, #tpu.memory_space<vmem>>, %arg6: memref<64x128xbf16, #tpu.memory_space<vmem>>, %arg7: memref<1x128xf32, #tpu.memory_space<vmem>>, %arg8: memref<128x8xbf16, #tpu.memory_space<vmem>>, %arg9: memref<1x8xf32, #tpu.memory_space<vmem>>, %arg10: memref<8x8xf32, #tpu.memory_space<vmem>>) attributes {dimension_semantics = [#tpu.dimension_semantics<parallel>], iteration_bounds = array<i64: 1>, scalar_prefetch = 0 : i64, scratch_operands = 0 : i64, tpu.core_type = #tpu.core_type<tc>, window_params = [{transform_indices = @transform_0, window_bounds = array<i64: 8, 8>}, {transform_indices = @transform_1, window_bounds = array<i64: 8, 4>}, {pipeline_mode = #tpu.pipeline_mode<synchronous>, transform_indices = @transform_2, window_bounds = array<i64: 8, 64>}, {pipeline_mode = #tpu.pipeline_mode<synchronous>, transform_indices = @transform_3, window_bounds = array<i64: 4, 64>}, {pipeline_mode = #tpu.pipeline_mode<synchronous>, transform_indices = @transform_4, window_bounds = array<i64: 1, 64>}, {pipeline_mode = #tpu.pipeline_mode<synchronous>, transform_indices = @transform_5, window_bounds = array<i64: 64, 128>}, {pipeline_mode = #tpu.pipeline_mode<synchronous>, transform_indices = @transform_6, window_bounds = array<i64: 1, 128>}, {pipeline_mode = #tpu.pipeline_mode<synchronous>, transform_indices = @transform_7, window_bounds = array<i64: 128, 8>}, {pipeline_mode = #tpu.pipeline_mode<synchronous>, transform_indices = @transform_8, window_bounds = array<i64: 1, 8>}, {transform_indices = @transform_9, window_bounds = array<i64: 8, 8>}]} {
    %c0 = arith.constant 0 : index
    %c0_0 = arith.constant 0 : index
    %0 = vector.load %arg1[%c0, %c0_0] : memref<8x8xf32, #tpu.memory_space<vmem>>, vector<8x8xf32>
    %1 = arith.truncf %0 : vector<8x8xf32> to vector<8x8xbf16>
    %c0_1 = arith.constant 0 : index
    %c0_2 = arith.constant 0 : index
    %2 = vector.load %arg2[%c0_1, %c0_2] : memref<8x4xf32, #tpu.memory_space<vmem>>, vector<8x4xf32>
    %3 = arith.truncf %2 : vector<8x4xf32> to vector<8x4xbf16>
    %c0_3 = arith.constant 0 : index
    %c0_4 = arith.constant 0 : index
    %4 = vector.load %arg3[%c0_3, %c0_4] : memref<8x64xbf16, #tpu.memory_space<vmem>>, vector<8x64xbf16>
    %cst = arith.constant dense<0.000000e+00> : vector<8x64xf32>
    %5 = tpu.matmul %1, %4, %cst {dimension_numbers = #tpu.dot_dimension_numbers<[1], [0], [0], [1], [0, 0, 1, 1], [], []>} : vector<8x8xbf16>, vector<8x64xbf16>, vector<8x64xf32> -> vector<8x64xf32>
    %c0_5 = arith.constant 0 : index
    %c0_6 = arith.constant 0 : index
    %6 = vector.load %arg4[%c0_5, %c0_6] : memref<4x64xbf16, #tpu.memory_space<vmem>>, vector<4x64xbf16>
    %cst_7 = arith.constant dense<0.000000e+00> : vector<8x64xf32>
    %7 = tpu.matmul %3, %6, %cst_7 {dimension_numbers = #tpu.dot_dimension_numbers<[1], [0], [0], [1], [0, 0, 1, 1], [], []>} : vector<8x4xbf16>, vector<4x64xbf16>, vector<8x64xf32> -> vector<8x64xf32>
    %8 = arith.addf %5, %7 : vector<8x64xf32>
    %c0_8 = arith.constant 0 : index
    %c0_9 = arith.constant 0 : index
    %9 = vector.load %arg5[%c0_8, %c0_9] : memref<1x64xf32, #tpu.memory_space<vmem>>, vector<1x64xf32>
    %10 = vector.broadcast %9 : vector<1x64xf32> to vector<8x64xf32>
    %11 = arith.addf %8, %10 : vector<8x64xf32>
    %cst_10 = arith.constant 0.000000e+00 : f32
    %12 = vector.broadcast %cst_10 : f32 to vector<8x64xf32>
    %13 = arith.maximumf %11, %12 : vector<8x64xf32>
    %14 = arith.truncf %13 : vector<8x64xf32> to vector<8x64xbf16>
    %c0_11 = arith.constant 0 : index
    %c0_12 = arith.constant 0 : index
    %15 = vector.load %arg6[%c0_11, %c0_12] : memref<64x128xbf16, #tpu.memory_space<vmem>>, vector<64x128xbf16>
    %cst_13 = arith.constant dense<0.000000e+00> : vector<8x128xf32>
    %16 = tpu.matmul %14, %15, %cst_13 {dimension_numbers = #tpu.dot_dimension_numbers<[1], [0], [0], [1], [0, 0, 1, 1], [], []>} : vector<8x64xbf16>, vector<64x128xbf16>, vector<8x128xf32> -> vector<8x128xf32>
    %c0_14 = arith.constant 0 : index
    %c0_15 = arith.constant 0 : index
    %17 = vector.load %arg7[%c0_14, %c0_15] : memref<1x128xf32, #tpu.memory_space<vmem>>, vector<1x128xf32>
    %18 = vector.broadcast %17 : vector<1x128xf32> to vector<8x128xf32>
    %19 = arith.addf %16, %18 : vector<8x128xf32>
    %cst_16 = arith.constant 0.000000e+00 : f32
    %20 = vector.broadcast %cst_16 : f32 to vector<8x128xf32>
    %21 = arith.maximumf %19, %20 : vector<8x128xf32>
    %22 = arith.truncf %21 : vector<8x128xf32> to vector<8x128xbf16>
    %c0_17 = arith.constant 0 : index
    %c0_18 = arith.constant 0 : index
    %23 = vector.load %arg8[%c0_17, %c0_18] : memref<128x8xbf16, #tpu.memory_space<vmem>>, vector<128x8xbf16>
    %cst_19 = arith.constant dense<0.000000e+00> : vector<8x8xf32>
    %24 = tpu.matmul %22, %23, %cst_19 {dimension_numbers = #tpu.dot_dimension_numbers<[1], [0], [0], [1], [0, 0, 1, 1], [], []>} : vector<8x128xbf16>, vector<128x8xbf16>, vector<8x8xf32> -> vector<8x8xf32>
    %c0_20 = arith.constant 0 : index
    %c0_21 = arith.constant 0 : index
    %25 = vector.load %arg9[%c0_20, %c0_21] : memref<1x8xf32, #tpu.memory_space<vmem>>, vector<1x8xf32>
    %26 = vector.broadcast %25 : vector<1x8xf32> to vector<8x8xf32>
    %27 = arith.addf %24, %26 : vector<8x8xf32>
    %c0_22 = arith.constant 0 : index
    %c0_23 = arith.constant 0 : index
    %28 = vector.load %arg10[%c0_22, %c0_23] : memref<8x8xf32, #tpu.memory_space<vmem>>, vector<8x8xf32>
    tpu.vector_store %arg10[%c0_22, %c0_23], %27 {strides = array<i32>} : memref<8x8xf32, #tpu.memory_space<vmem>>, vector<8x8xf32>,
    return
  }
  func.func @transform_0(%arg0: i32) -> (i32, i32) {
    %c0_i32 = arith.constant 0 : i32
    %c0_i32_0 = arith.constant 0 : i32
    return %arg0, %c0_i32 : i32, i32
  }
  func.func @transform_1(%arg0: i32) -> (i32, i32) {
    %c0_i32 = arith.constant 0 : i32
    %c0_i32_0 = arith.constant 0 : i32
    return %arg0, %c0_i32 : i32, i32
  }
  func.func @transform_2(%arg0: i32) -> (i32, i32) {
    %c0_i32 = arith.constant 0 : i32
    %c0_i32_0 = arith.constant 0 : i32
    %c0_i32_1 = arith.constant 0 : i32
    return %c0_i32, %c0_i32_0 : i32, i32
  }
  func.func @transform_3(%arg0: i32) -> (i32, i32) {
    %c0_i32 = arith.constant 0 : i32
    %c0_i32_0 = arith.constant 0 : i32
    %c0_i32_1 = arith.constant 0 : i32
    return %c0_i32, %c0_i32_0 : i32, i32
  }
  func.func @transform_4(%arg0: i32) -> (i32, i32) {
    %c0_i32 = arith.constant 0 : i32
    %c0_i32_0 = arith.constant 0 : i32
    %c0_i32_1 = arith.constant 0 : i32
    return %c0_i32, %c0_i32_0 : i32, i32
  }
  func.func @transform_5(%arg0: i32) -> (i32, i32) {
    %c0_i32 = arith.constant 0 : i32
    %c0_i32_0 = arith.constant 0 : i32
    %c0_i32_1 = arith.constant 0 : i32
    return %c0_i32, %c0_i32_0 : i32, i32
  }
  func.func @transform_6(%arg0: i32) -> (i32, i32) {
    %c0_i32 = arith.constant 0 : i32
    %c0_i32_0 = arith.constant 0 : i32
    %c0_i32_1 = arith.constant 0 : i32
    return %c0_i32, %c0_i32_0 : i32, i32
  }
  func.func @transform_7(%arg0: i32) -> (i32, i32) {
    %c0_i32 = arith.constant 0 : i32
    %c0_i32_0 = arith.constant 0 : i32
    %c0_i32_1 = arith.constant 0 : i32
    return %c0_i32, %c0_i32_0 : i32, i32
  }
  func.func @transform_8(%arg0: i32) -> (i32, i32) {
    %c0_i32 = arith.constant 0 : i32
    %c0_i32_0 = arith.constant 0 : i32
    %c0_i32_1 = arith.constant 0 : i32
    return %c0_i32, %c0_i32_0 : i32, i32
  }
  func.func @transform_9(%arg0: i32) -> (i32, i32) {
    %c0_i32 = arith.constant 0 : i32
    %c0_i32_0 = arith.constant 0 : i32
    return %arg0, %c0_i32 : i32, i32
  }
}

</mosaic_0001>

<bundles_post_ra>
// kernel: state_generator_forward.1
= control target key start
LH: loop header
LB: loop body
LE: loop exit
PB: predicated region body
PF: predicated region fallthrough
CT: control target
= control target key end

     0   :  { %14 = vsyncpa [#allocation3], 0  ;;  %vm44_vm0 = vcmask 1041408   ;;  %vm65_vm1 = vcmask 1043456   ;;  %vm40_vm2 = vcmask 31744   ;;  %vm61_vm3 = vcmask 64512   ;;  %s454_s0 = inlined_call_operand.vmem [shape: f32[2,8], index: 0, kind: input, shape index: {}]   ;;  %s455_s1 = inlined_call_operand.vmem [shape: f32[2,4], index: 1, kind: input, shape index: {}]   ;;  %s456_s2 = inlined_call_operand.vmem [shape: bf16[8,64], index: 2, kind: input, shape index: {}]   ;;  %s457_s3 = inlined_call_operand.vmem [shape: bf16[4,64], index: 3, kind: input, shape index: {}]   ;;  %s458_s4 = inlined_call_operand.vmem [shape: f32[1,64], index: 4, kind: input, shape index: {}]   ;;  %s459_s5 = inlined_call_operand.vmem [shape: bf16[64,128], index: 5, kind: input, shape index: {}]   ;;  %s460_s6 = inlined_call_operand.vmem [shape: f32[1,128], index: 6, kind: input, shape index: {}]   ;;  %s461_s7 = inlined_call_operand.vmem [shape: bf16[128,8], index: 7, kind: input, shape index: {}]   ;;  %s462_s8 = inlined_call_operand.vmem [shape: f32[1,8], index: 8, kind: input, shape index: {}]   ;;  %s463_s9 = inlined_call_operand.hbm [shape: f32[2,8], index: 9, kind: output, shape index: {}]  }
   0x1   :  { %v39_v0 = vld [vmem:[%s457_s3] sm:$0x3]  ;;  %v298_v8 = vld [vmem:[%s459_s5 + $0x18] sm:$0xff]  ;;  %v297_v9 = vld [vmem:[%s459_s5 + $0x10] sm:$0xff]  ;;  %vm125_vm4 = vcmask 523264  }
   0x2   :  { %v46_v1 = vsel %vm44_vm0, %v39_v0, 0  ;;  %v38_v2 = vld [vmem:[%s456_s2] sm:$0xf]  ;;  %133 = vmatpush.bf16.msra.mxu2 %v298_v8  ;;  %v296_v10 = vld [vmem:[%s459_s5 + $0x8] sm:$0xff]  ;;  %v306_v12 = vld [vmem:[%s461_s7 + $0x38] sm:$0xff] }
   0x3   :  { %v36_v3 = vld [vmem:[%s455_s1] sm:$0xff]  ;;  %55 = vmatpush.bf16.msra.mxu0 %v46_v1  ;;  %v67_v5 = vsel %vm65_vm1, %v38_v2, 0  ;;  %212 = vmatpush.bf16.msra.mxu3 %v306_v12  ;;  %v305_v13 = vld [vmem:[%s461_s7 + $0x30] sm:$0xff]  ;;  %v304_v14 = vld [vmem:[%s461_s7 + $0x28] sm:$0xff] }
   0x4   :  { %v34_v4 = vld [vmem:[%s454_s0] sm:$0xff]  ;;  %v37_v6 = vpack.c.bf16 %v36_v3, %v36_v3  ;;  %76 = vmatpush.bf16.msra.mxu1 %v67_v5  ;;  %v302_v16 = vld [vmem:[%s461_s7 + $0x18] sm:$0xff]  ;;  %v301_v17 = vld [vmem:[%s461_s7 + $0x10] sm:$0xff] }
   0x5   :  { %v35_v7 = vpack.c.bf16 %v34_v4, %v34_v4  ;;  %v295_v11 = vld [vmem:[%s459_s5] sm:$0xff]  ;;  %v300_v27 = vld [vmem:[%s461_s7 + $0x8] sm:$0xff] }
   0x6   :  { %244 = vmatmul.msk.bf16.vlgmr.msra.gmra.mxu0 %vm40_vm2, %v37_v6  ;;  %134 = vmatpush.bf16.msra.mxu2 %v297_v9  ;;  %v303_v15 = vld [vmem:[%s461_s7 + $0x20] sm:$0xff] }
   0x7   :  { %245 = vmatmul.msk.bf16.vlgmr.msra.gmra.mxu1 %vm61_vm3, %v35_v7  ;;  %213 = vmatpush.bf16.msra.mxu3 %v305_v13  ;;  %v310_v19 = vld [vmem:[%s458_s4] ss:$0 sm:$0xff] }
   0x8   :  { %v299_v28 = vld [vmem:[%s461_s7] sm:$0xff] }
   0x9   :  { %v311_v29 = vld [vmem:[%s460_s6] ss:$0 sm:$0xff] }
   0xa   :  { %135 = vmatpush.bf16.msra.mxu2 %v296_v10  ;;  %v312_v35 = vld [vmem:[%s462_s8] ss:$0 sm:$0xff] }
   0xb   :  { %214 = vmatpush.bf16.msra.mxu3 %v304_v14 }
   0xe   :  { %136 = vmatpush.bf16.msra.mxu2 %v295_v11 }
   0xf   :  { %215 = vmatpush.bf16.msra.mxu3 %v303_v15 }
  0x13   :  { %216 = vmatpush.bf16.msra.mxu3 %v302_v16 }
  0x17   :  { %217 = vmatpush.bf16.msra.mxu3 %v301_v17 }
  0x1b   :  { %218 = vmatpush.bf16.msra.mxu3 %v300_v27 }
  0x1f   :  { %219 = vmatpush.bf16.msra.mxu3 %v299_v28 }
  0x83   :  { %v57_v18 = vpop.f32.mrf.mxu0 }
  0x84   :  { %v78_v20 = vpop.f32.mrf.mxu1 }
  0x85   :  { %v79_v21 = vadd.f32 %v78_v20, %v57_v18 }
  0x87   :  { %v86_v22 = vadd.f32 %v310_v19, %v79_v21 }
  0x89   :  { %v87_v23 = vmax.f32 %v86_v22, 0.0 }
  0x8b   :  { %v88_v24 = vpack.c.bf16 %v87_v23, %v87_v23  ;;  %v59_v25 = vpop.f32.mrf.mxu0 }
  0x8c   :  { %v80_v26 = vpop.f32.mrf.mxu1 }
  0x8d   :  { %262 = vmatmul.msk.bf16.vlgmr.msra.gmra.mxu2 %vm125_vm4, %v88_v24 }
 0x110   :  { %v138_v30 = vpop.f32.mrf.mxu2 }
 0x111   :  { %v139_v31 = vadd.f32 %v311_v29, %v138_v30 }
 0x113   :  { %v142_v32 = vmax.f32 %v139_v31, 0.0 }
 0x115   :  { %v143_v33 = vpack.c.bf16 %v142_v32, %v142_v32 }
 0x117   :  { %220 = vmatmul.bf16.vlgmr.msra.gmra.mxu3 %v143_v33 }
 0x118   :  { %v140_v34 = vpop.f32.mrf.mxu2 }
 0x19a   :  { %v221_v36 = vpop.f32.mrf.mxu3 }
 0x19b   :  { %v222_v37 = vadd.f32 %v312_v35, %v221_v36 }
 0x19d   :  { %225 = vst.msk [vmem:[#allocation2] sm:$0xff] %vm61_vm3, %v222_v37 }
 0x1a2   :  { %v223_v38 = vpop.f32.mrf.mxu3 }
 0x1a3   :  { %229 = vsyncadd [#allocation3], 96  ;;  %s232_s6 = sshll.u32 %s463_s9, 4  ;;  %s339_s0 = smov [#allocation2]   ;;  %s233_s6 = int_to_ptr.hbm [resolvable:$true] %s232_s6 }
 0x1a4   :  { %s230_s1 = sshll.u32 %s339_s0, 4  ;;  %s340_s19 = smov 32   ;;  %s231_s1 = int_to_ptr.vmem [resolvable:$true] %s230_s1 }
 0x1a5   :  { %s341_s20 = smov 2  }
 0x1a6   :  { %238 = dma.vmem_to_hbm [thread:$0]  %s231_s1, 32, %s233_s6, [#allocation3], %s340_s19, %s340_s19, %s341_s20  }
 0x1a7   :  { %337 = dma.done.wait [#allocation3], 128  }
 0x1a8   :  { %338 = vsyncadd [#allocation3], 4294967168 }
 0x1a9   :  { %243 = vsyncpa [#allocation3], 1 }

</bundles_post_ra>
